<compile_context>
chip_gen: v5e
topology: v5e:2x2
jax: 0.10.0
libtpu: 0.0.40
codegen_flags: <defaults>
</compile_context>

<pallas_src>
import functools

import jax
import jax.numpy as jnp
from jax.experimental import pallas as pl
from jax.experimental.pallas import tpu as pltpu

LN_EPS = 1e-5  # matches torch.nn.LayerNorm default


def _round_up(a: int, m: int) -> int:
    return (a + m - 1) // m * m


def prenorm_linear_kernel(x_ref, gamma_ref, beta_ref, w_ref, b_ref, o_ref, y_scratch):
    # x_ref: (TM, D)  gamma/beta: (1, D)  w_ref: (D, TN) bf16  b_ref: (1, TN) f32
    # o_ref: (TM, TN)  y_scratch: (TM, D) bf16 (normalized rows, reused across TN tiles)
    j = pl.program_id(1)

    @pl.when(j == 0)
    def _():
        x = x_ref[...].astype(jnp.float32)
        inv_d = 1.0 / x.shape[-1]
        # Fused single-pass statistics: one cross-lane reduce pair per row tile.
        s = jnp.sum(x, axis=-1, keepdims=True)
        ss = jnp.sum(x * x, axis=-1, keepdims=True)
        mean = s * inv_d
        var = jnp.maximum(ss * inv_d - mean * mean, 0.0)
        x_hat = (x - mean) * jax.lax.rsqrt(var + LN_EPS)   # rsqrt -> EUP slot
        y = x_hat * gamma_ref[...].astype(jnp.float32) + beta_ref[...].astype(jnp.float32)
        y_scratch[...] = y.astype(y_scratch.dtype)          # bf16 MXU operand

    # fn(.) = Linear(dim -> hidden): bf16 x bf16 matmul, f32 accumulation on the MXU.
    out = jnp.dot(y_scratch[...], w_ref[...], preferred_element_type=jnp.float32)
    out = out + b_ref[...]
    o_ref[...] = out.astype(o_ref.dtype)


@functools.partial(jax.jit, static_argnames=("tm", "tn"))
def prenorm_linear(x, gamma, beta, w, b, *, tm=256, tn=512):
    """x: (B, S, D) -> (B, S, H).  Fused LayerNorm(D) then Linear(D -> H)."""
    B, S, D = x.shape
    H = w.shape[1]
    N = B * S

    x2d = x.reshape(N, D)

    # ---- row (token) tile: multiple of 8 sublanes; pad the remainder rows ----
    tm = max(8, min(tm, _round_up(N, 8)))
    n_pad = _round_up(N, tm)
    if n_pad != N:
        x2d = jnp.pad(x2d, ((0, n_pad - N), (0, 0)))

    # ---- hidden tile: lane-dense (multiple of 128) unless H is small ----
    if H <= tn:
        tn = H
        h_pad = H
    else:
        tn = _round_up(min(tn, H), 128)
        h_pad = _round_up(H, tn)

    # bf16 weight (halves DMA bytes, feeds the MXU); bias stays f32 for the add.
    w_bf = w.astype(jnp.bfloat16)
    b_f32 = b.astype(jnp.float32)
    if h_pad != H:
        w_bf = jnp.pad(w_bf, ((0, 0), (0, h_pad - H)))
        b_f32 = jnp.pad(b_f32, ((0, 0), (0, h_pad - H)))

    grid = (n_pad // tm, h_pad // tn)
    itemsize = x.dtype.itemsize

    cost = pl.CostEstimate(
        flops=2 * n_pad * D * h_pad + 8 * n_pad * D,
        transcendentals=n_pad,
        bytes_accessed=(n_pad * D * itemsize          # x
                        + D * h_pad * 2               # w (bf16)
                        + (2 * D + h_pad) * 4         # gamma, beta, b
                        + n_pad * h_pad * itemsize),  # out
    )

    out2d = pl.pallas_call(
        prenorm_linear_kernel,
        out_shape=jax.ShapeDtypeStruct((n_pad, h_pad), x.dtype),
        grid=grid,
        in_specs=[
            pl.BlockSpec((tm, D), lambda i, j: (i, 0)),   # x: changes only with i
            pl.BlockSpec((1, D), lambda i, j: (0, 0)),    # gamma: resident
            pl.BlockSpec((1, D), lambda i, j: (0, 0)),    # beta:  resident
            pl.BlockSpec((D, tn), lambda i, j: (0, j)),   # w: changes only with j
            pl.BlockSpec((1, tn), lambda i, j: (0, j)),   # b
        ],
        out_specs=pl.BlockSpec((tm, tn), lambda i, j: (i, j)),
        scratch_shapes=[pltpu.VMEM((tm, D), jnp.bfloat16)],   # normalized rows, reused over j
        compiler_params=pltpu.CompilerParams(
            # row axis shards across TensorCores (v7x megacore); hidden axis is
            # sequential so the LN scratch computed at j == 0 is valid for j > 0.
            dimension_semantics=("parallel", "arbitrary"),
            vmem_limit_bytes=48 * 1024 * 1024,
        ),
        cost_estimate=cost,
    )(x2d, gamma, beta, w_bf, b_f32)

    return out2d[:N, :H].reshape(B, S, H)


def prenorm_reference(x, gamma, beta, w, b):
    xf = x.astype(jnp.float32)
    mean = jnp.mean(xf, axis=-1, keepdims=True)
    var = jnp.mean((xf - mean) ** 2, axis=-1, keepdims=True)
    y = (xf - mean) * jax.lax.rsqrt(var + LN_EPS) * gamma + beta
    return (y @ w.astype(jnp.float32) + b).astype(x.dtype)


if __name__ == "__main__":
    B, S, D, H = 2, 8, 32, 64  # batch, seq, dim, hidden

    key = jax.random.PRNGKey(0)
    kx, kg, kb, kw, kbb = jax.random.split(key, 5)

    x = jax.random.normal(kx, (B, S, D), dtype=jnp.float32)

    # Deterministic parameter init (synthetic, not checkpoint-loaded).
    gamma = (1.0 + 0.01 * jax.random.normal(kg, (1, D))).astype(jnp.float32)
    beta = (0.01 * jax.random.normal(kb, (1, D))).astype(jnp.float32)
    w = (jax.random.normal(kw, (D, H)) / jnp.sqrt(D)).astype(jnp.float32)
    b = (0.01 * jax.random.normal(kbb, (1, H))).astype(jnp.float32)

    out = prenorm_linear(x, gamma, beta, w, b)
    out = jax.block_until_ready(out)

    ref = prenorm_reference(x, gamma, beta, w, b)
    assert out.shape == (B, S, H), out.shape
    # bf16 MXU operands (f32 accumulation) vs an all-f32 reference -> loosened tolerance.
    assert jnp.allclose(out, ref, atol=2e-2, rtol=2e-2), "mismatch vs reference"

    print("KERNEL_OK")
</pallas_src>

<mosaic_0001>
module attributes {stable_mosaic.version = 11 : i64} {
  func.func @prenorm_linear_kernel(%arg0: i32, %arg1: i32, %arg2: memref<16x32xf32, #tpu.memory_space<vmem>>, %arg3: memref<1x32xf32, #tpu.memory_space<vmem>>, %arg4: memref<1x32xf32, #tpu.memory_space<vmem>>, %arg5: memref<32x64xbf16, #tpu.memory_space<vmem>>, %arg6: memref<1x64xf32, #tpu.memory_space<vmem>>, %arg7: memref<16x64xf32, #tpu.memory_space<vmem>>, %arg8: memref<16x32xbf16, #tpu.memory_space<vmem>>) attributes {dimension_semantics = [#tpu.dimension_semantics<parallel>, #tpu.dimension_semantics<arbitrary>], iteration_bounds = array<i64: 1, 1>, scalar_prefetch = 0 : i64, scratch_operands = 1 : i64, tpu.core_type = #tpu.core_type<tc>, window_params = [{transform_indices = @transform_0, window_bounds = array<i64: 16, 32>}, {pipeline_mode = #tpu.pipeline_mode<synchronous>, transform_indices = @transform_1, window_bounds = array<i64: 1, 32>}, {pipeline_mode = #tpu.pipeline_mode<synchronous>, transform_indices = @transform_2, window_bounds = array<i64: 1, 32>}, {transform_indices = @transform_3, window_bounds = array<i64: 32, 64>}, {transform_indices = @transform_4, window_bounds = array<i64: 1, 64>}, {transform_indices = @transform_5, window_bounds = array<i64: 16, 64>}]} {
    %c0_i32 = arith.constant 0 : i32
    %0 = arith.cmpi eq, %arg1, %c0_i32 : i32
    %1 = arith.extui %0 : i1 to i32
    %c0_i32_0 = arith.constant 0 : i32
    %2 = arith.cmpi ne, %1, %c0_i32_0 : i32
    scf.if %2 {
      %c0_8 = arith.constant 0 : index
      %c0_9 = arith.constant 0 : index
      %10 = vector.load %arg2[%c0_8, %c0_9] : memref<16x32xf32, #tpu.memory_space<vmem>>, vector<16x32xf32>
      %cst_10 = arith.constant dense<0.000000e+00> : vector<16xf32>
      %11 = vector.multi_reduction <add>, %10, %cst_10 [1] : vector<16x32xf32> to vector<16xf32>
      %12 = vector.shape_cast %11 : vector<16xf32> to vector<16x1xf32>
      %13 = arith.mulf %10, %10 : vector<16x32xf32>
      %cst_11 = arith.constant dense<0.000000e+00> : vector<16xf32>
      %14 = vector.multi_reduction <add>, %13, %cst_11 [1] : vector<16x32xf32> to vector<16xf32>
      %15 = vector.shape_cast %14 : vector<16xf32> to vector<16x1xf32>
      %cst_12 = arith.constant 3.125000e-02 : f32
      %16 = vector.broadcast %cst_12 : f32 to vector<16x1xf32>
      %17 = arith.mulf %12, %16 : vector<16x1xf32>
      %cst_13 = arith.constant 3.125000e-02 : f32
      %18 = vector.broadcast %cst_13 : f32 to vector<16x1xf32>
      %19 = arith.mulf %15, %18 : vector<16x1xf32>
      %20 = arith.mulf %17, %17 : vector<16x1xf32>
      %21 = arith.subf %19, %20 : vector<16x1xf32>
      %cst_14 = arith.constant 0.000000e+00 : f32
      %22 = vector.broadcast %cst_14 : f32 to vector<16x1xf32>
      %23 = arith.maximumf %21, %22 : vector<16x1xf32>
      %24 = vector.broadcast %17 : vector<16x1xf32> to vector<16x32xf32>
      %25 = arith.subf %10, %24 : vector<16x32xf32>
      %cst_15 = arith.constant 9.99999974E-6 : f32
      %26 = vector.broadcast %cst_15 : f32 to vector<16x1xf32>
      %27 = arith.addf %23, %26 : vector<16x1xf32>
      %28 = math.rsqrt %27 : vector<16x1xf32>
      %29 = vector.broadcast %28 : vector<16x1xf32> to vector<16x32xf32>
      %30 = arith.mulf %25, %29 : vector<16x32xf32>
      %c0_16 = arith.constant 0 : index
      %c0_17 = arith.constant 0 : index
      %31 = vector.load %arg3[%c0_16, %c0_17] : memref<1x32xf32, #tpu.memory_space<vmem>>, vector<1x32xf32>
      %32 = vector.broadcast %31 : vector<1x32xf32> to vector<16x32xf32>
      %33 = arith.mulf %30, %32 : vector<16x32xf32>
      %c0_18 = arith.constant 0 : index
      %c0_19 = arith.constant 0 : index
      %34 = vector.load %arg4[%c0_18, %c0_19] : memref<1x32xf32, #tpu.memory_space<vmem>>, vector<1x32xf32>
      %35 = vector.broadcast %34 : vector<1x32xf32> to vector<16x32xf32>
      %36 = arith.addf %33, %35 : vector<16x32xf32>
      %37 = arith.truncf %36 : vector<16x32xf32> to vector<16x32xbf16>
      %c0_20 = arith.constant 0 : index
      %c0_21 = arith.constant 0 : index
      %38 = vector.load %arg8[%c0_20, %c0_21] : memref<16x32xbf16, #tpu.memory_space<vmem>>, vector<16x32xbf16>
      tpu.vector_store %arg8[%c0_20, %c0_21], %37 {strides = array<i32>} : memref<16x32xbf16, #tpu.memory_space<vmem>>, vector<16x32xbf16>,
    } else {
    }
    %c0 = arith.constant 0 : index
    %c0_1 = arith.constant 0 : index
    %3 = vector.load %arg8[%c0, %c0_1] : memref<16x32xbf16, #tpu.memory_space<vmem>>, vector<16x32xbf16>
    %c0_2 = arith.constant 0 : index
    %c0_3 = arith.constant 0 : index
    %4 = vector.load %arg5[%c0_2, %c0_3] : memref<32x64xbf16, #tpu.memory_space<vmem>>, vector<32x64xbf16>
    %cst = arith.constant dense<0.000000e+00> : vector<16x64xf32>
    %5 = tpu.matmul %3, %4, %cst {dimension_numbers = #tpu.dot_dimension_numbers<[1], [0], [0], [1], [0, 0, 1, 1], [], []>} : vector<16x32xbf16>, vector<32x64xbf16>, vector<16x64xf32> -> vector<16x64xf32>
    %c0_4 = arith.constant 0 : index
    %c0_5 = arith.constant 0 : index
    %6 = vector.load %arg6[%c0_4, %c0_5] : memref<1x64xf32, #tpu.memory_space<vmem>>, vector<1x64xf32>
    %7 = vector.broadcast %6 : vector<1x64xf32> to vector<16x64xf32>
    %8 = arith.addf %5, %7 : vector<16x64xf32>
    %c0_6 = arith.constant 0 : index
    %c0_7 = arith.constant 0 : index
    %9 = vector.load %arg7[%c0_6, %c0_7] : memref<16x64xf32, #tpu.memory_space<vmem>>, vector<16x64xf32>
    tpu.vector_store %arg7[%c0_6, %c0_7], %8 {strides = array<i32>} : memref<16x64xf32, #tpu.memory_space<vmem>>, vector<16x64xf32>,
    return
  }
  func.func @transform_0(%arg0: i32, %arg1: i32) -> (i32, i32) {
    %c0_i32 = arith.constant 0 : i32
    %c0_i32_0 = arith.constant 0 : i32
    return %arg0, %c0_i32 : i32, i32
  }
  func.func @transform_1(%arg0: i32, %arg1: i32) -> (i32, i32) {
    %c0_i32 = arith.constant 0 : i32
    %c0_i32_0 = arith.constant 0 : i32
    %c0_i32_1 = arith.constant 0 : i32
    return %c0_i32, %c0_i32_0 : i32, i32
  }
  func.func @transform_2(%arg0: i32, %arg1: i32) -> (i32, i32) {
    %c0_i32 = arith.constant 0 : i32
    %c0_i32_0 = arith.constant 0 : i32
    %c0_i32_1 = arith.constant 0 : i32
    return %c0_i32, %c0_i32_0 : i32, i32
  }
  func.func @transform_3(%arg0: i32, %arg1: i32) -> (i32, i32) {
    %c0_i32 = arith.constant 0 : i32
    %c0_i32_0 = arith.constant 0 : i32
    return %c0_i32, %arg1 : i32, i32
  }
  func.func @transform_4(%arg0: i32, %arg1: i32) -> (i32, i32) {
    %c0_i32 = arith.constant 0 : i32
    %c0_i32_0 = arith.constant 0 : i32
    return %c0_i32, %arg1 : i32, i32
  }
  func.func @transform_5(%arg0: i32, %arg1: i32) -> (i32, i32) {
    %c0_i32 = arith.constant 0 : i32
    return %arg0, %arg1 : i32, i32
  }
}

</mosaic_0001>

<bundles_post_ra>
// kernel: prenorm_linear.1
= control target key start
LH: loop header
LB: loop body
LE: loop exit
PB: predicated region body
PF: predicated region fallthrough
CT: control target
= control target key end

     0   :  { %vm28_vm0 = vcmask 261120   ;;  %s276_s0 = inlined_call_operand.vmem [shape: f32[16,32], index: 0, kind: input, shape index: {}]   ;;  %s277_s1 = inlined_call_operand.vmem [shape: f32[1,32], index: 1, kind: input, shape index: {}]   ;;  %s278_s2 = inlined_call_operand.vmem [shape: f32[1,32], index: 2, kind: input, shape index: {}]   ;;  %s279_s3 = inlined_call_operand.vmem [shape: bf16[32,64], index: 3, kind: input, shape index: {}]   ;;  %s280_s4 = inlined_call_operand.vmem [shape: f32[1,64], index: 4, kind: input, shape index: {}]   ;;  %s281_s5 = inlined_call_operand.hbm [shape: f32[16,64], index: 5, kind: output, shape index: {}]  }
   0x1   :  { %v26_v0 = vld [vmem:[%s276_s0] sm:$0xff]  ;;  %v27_v3 = vld [vmem:[%s276_s0 + $0x8] sm:$0xff] }
   0x2   :  { %v29_v1 = vsel %vm28_vm0, %v26_v0, 0.0  ;;  %v35_v2 = vmul.f32 %v26_v0, %v26_v0 }
   0x3   :  { %30 = vadd.xlane.f32.xlu0 %v29_v1 }
   0x4   :  { %10 = vsyncpa [#allocation4], 0  ;;  %v37_v4 = vsel %vm28_vm0, %v35_v2, 0.0  ;;  %v36_v5 = vmul.f32 %v27_v3, %v27_v3  ;;  %v32_v6 = vsel %vm28_vm0, %v27_v3, 0.0  ;;  %v177_v22 = vld [vmem:[%s279_s3 + $0x8] sm:$0xff]  ;;  %v176_v24 = vld [vmem:[%s279_s3] sm:$0xff] }
   0x5   :  { %38 = vadd.xlane.f32.xlu1 %v37_v4  ;;  %133 = vmatpush.bf16.msra.mxu0 %v177_v22  ;;  %v181_v34 = vld [vmem:[%s277_s1] ss:$0 sm:$0xff]  ;;  %vm93_vm5 = vcmask 257024   ;;  %vm141_vm8 = vcmask 523264   ;;  %s214_s28 = smov [#allocation3]   ;;  %s150_s7 = sshll.u32 %s281_s5, 4  ;;  %s151_s7 = int_to_ptr.hbm [resolvable:$true] %s150_s7 }
   0x6   :  { %v40_v7 = vsel %vm28_vm0, %v36_v5, 0.0  ;;  %v182_v37 = vld [vmem:[%s278_s2] ss:$0 sm:$0xff]  ;;  %s148_s29 = sshll.u32 %s214_s28, 4  ;;  %s215_s8 = smov 128   ;;  %s149_s29 = int_to_ptr.vmem [resolvable:$true] %s148_s29 }
   0x7   :  { %v183_v53 = vld [vmem:[%s280_s4] ss:$0 sm:$0xff]  ;;  %s216_s9 = smov 8  }
   0x9   :  { %134 = vmatpush.bf16.msra.mxu0 %v176_v24 }
   0xb   :  { %33 = vadd.xlane.f32.xlu0 %v32_v6 }
   0xd   :  { %41 = vadd.xlane.f32.xlu1 %v40_v7 }
  0x76   :  { %v31_v8 = vpop.xlane.xlu0 %30 }
  0x77   :  { %v43_v9 = vmul.f32 0.03125, %v31_v8 }
  0x78   :  { %v39_v10 = vpop.xlane.xlu1 %38 }
  0x79   :  { %v47_v11 = vmul.f32 %v43_v9, %v43_v9  ;;  %v45_v12 = vmul.f32 0.03125, %v39_v10  ;;  %v53_v33 = vsub.f32 %v26_v0, %v43_v9 }
  0x7b   :  { %v49_v13 = vsub.f32 %v45_v12, %v47_v11 }
  0x7d   :  { %v51_v14 = vmax.f32 %v49_v13, 0.0 }
  0x7e   :  { %v34_v15 = vpop.xlane.xlu0 %33 }
  0x7f   :  { %v55_v16 = vadd.f32 1e-05, %v51_v14  ;;  %v44_v17 = vmul.f32 0.03125, %v34_v15 }
  0x80   :  { %v42_v18 = vpop.xlane.xlu1 %41 }
  0x81   :  { %184 = vrsqrt.f32 %v55_v16  ;;  %v48_v19 = vmul.f32 %v44_v17, %v44_v17  ;;  %v46_v20 = vmul.f32 0.03125, %v42_v18  ;;  %vm63_vm2 = vweird.f32 %v55_v16 }
  0x82   :  { %v54_v46 = vsub.f32 %v27_v3, %v44_v17 }
  0x83   :  { %v50_v21 = vsub.f32 %v46_v20, %v48_v19 }
  0x85   :  { %v52_v23 = vmax.f32 %v50_v21, 0.0 }
  0x87   :  { %v185_v25 = vpop.eup %184  ;;  %v56_v27 = vadd.f32 1e-05, %v52_v23 }
  0x88   :  { %v58_v26 = vmul.f32 %v185_v25, %v55_v16  ;;  %vm64_vm1 = vweird.f32 %v185_v25 }
  0x89   :  { %186 = vrsqrt.f32 %v56_v27  ;;  %vm65_vm3 = vmor %vm63_vm2, %vm64_vm1  ;;  %vm73_vm6 = vweird.f32 %v56_v27 }
  0x8a   :  { %v59_v28 = vmul.f32 %v185_v25, %v58_v26 }
  0x8c   :  { %v60_v29 = vmul.f32 0.5, %v59_v28 }
  0x8e   :  { %v61_v30 = vsub.f32 1.5, %v60_v29 }
  0x8f   :  { %v187_v31 = vpop.eup %186 }
  0x90   :  { %v62_v32 = vmul.f32 %v185_v25, %v61_v30  ;;  %v68_v35 = vmul.f32 %v187_v31, %v56_v27  ;;  %vm74_vm4 = vweird.f32 %v187_v31 }
  0x91   :  { %vm75_vm7 = vmor %vm73_vm6, %vm74_vm4 }
  0x92   :  { %v66_v36 = vsel %vm65_vm3, %v185_v25, %v62_v32  ;;  %v69_v39 = vmul.f32 %v187_v31, %v68_v35 }
  0x93   :  { %v77_v38 = vmul.f32 %v66_v36, %v53_v33 }
  0x94   :  { %v70_v41 = vmul.f32 0.5, %v69_v39 }
  0x95   :  { %v83_v40 = vmul.f32 %v181_v34, %v77_v38 }
  0x96   :  { %v71_v43 = vsub.f32 1.5, %v70_v41 }
  0x97   :  { %v89_v42 = vadd.f32 %v182_v37, %v83_v40 }
  0x98   :  { %v72_v45 = vmul.f32 %v187_v31, %v71_v43 }
  0x99   :  { %v91_v44 = vpack.c.bf16 %v89_v42, %v89_v42 }
  0x9a   :  { %v76_v47 = vsel %vm75_vm7, %v187_v31, %v72_v45 }
  0x9b   :  { %94 = vst.msk [vmem:[#allocation2] sm:$0xf] %vm93_vm5, %v91_v44  ;;  %v78_v48 = vmul.f32 %v76_v47, %v54_v46 }
  0x9d   :  { %v84_v49 = vmul.f32 %v181_v34, %v78_v48 }
  0x9f   :  { %v90_v50 = vadd.f32 %v182_v37, %v84_v49 }
  0xa1   :  { %v92_v51 = vpack.c.bf16 %v90_v50, %v90_v50 }
  0xa3   :  { %95 = vst.msk [vmem:[#allocation2 + $0x4] sm:$0xf] %vm93_vm5, %v92_v51 }
  0xaa   :  { %v175_v52 = vld [vmem:[#allocation2] sm:$0xff] }
  0xab   :  { %174 = vmatmul.msk.bf16.vlgmr.msra.gmra.mxu0 %vm28_vm0, %v175_v52 }
 0x128   :  { %v136_v54 = vpop.f32.mrf.mxu0 }
 0x129   :  { %v137_v55 = vadd.f32 %v183_v53, %v136_v54 }
 0x12b   :  { %142 = vst.msk [vmem:[#allocation3] sm:$0xff] %vm141_vm8, %v137_v55 }
 0x130   :  { %v138_v56 = vpop.f32.mrf.mxu0 }
 0x131   :  { %v139_v57 = vadd.f32 %v183_v53, %v138_v56 }
 0x133   :  { %143 = vst.msk [vmem:[#allocation3 + $0x8] sm:$0xff] %vm141_vm8, %v139_v57 }
 0x134   :  { %156 = dma.vmem_to_hbm [thread:$0]  %s149_s29, 256, %s151_s7, [#allocation4], %s215_s8, %s215_s8, %s216_s9  }
 0x135   :  { %212 = dma.done.wait [#allocation4], 256  }
 0x136   :  { %213 = vsyncadd [#allocation4], 4294967040 }
 0x137   :  { %161 = vsyncpa [#allocation4], 1 }

</bundles_post_ra>
